<compile_context>
chip_gen: v7x
topology: tpu7x:2x2x1
jax: 0.10.0
libtpu: 0.0.40
codegen_flags: <defaults>
</compile_context>

<pallas_src>
import numpy as np
import jax
import jax.numpy as jnp
from jax import lax
from jax.experimental import pallas as pl
from jax.experimental.pallas import tpu as pltpu

_PI_2 = np.float32(np.pi / 2.0)
_PI_4 = np.float32(np.pi / 4.0)

_LANES = 128
_SUB = 8
_MAX_BLOCK_ROWS = 4096          # (4096, 128) f32 tile = 2 MiB
_VMEM_LIMIT = 32 * 1024 * 1024  # plenty for in+out double buffering on all gens


def _atan(x):
    """float32 arctan: Cephes-style range reduction + minimax polynomial.

    Single reciprocal per call (select numerator/denominator, then one
    num * reciprocal(den)).  +/-inf -> +/-pi/2, NaN propagates.
    """
    ax = jnp.abs(x)
    big = ax > 2.414213562373095      # tan(3*pi/8)
    mid = ax > 0.4142135623730951     # tan(pi/8)
    # big: -1/ax ; mid: (ax-1)/(ax+1) ; small: ax/1
    num = jnp.where(big, jnp.float32(-1.0), jnp.where(mid, ax - 1.0, ax))
    den = jnp.where(big, ax, jnp.where(mid, ax + 1.0, jnp.float32(1.0)))
    xr = num * pl.reciprocal(den, approx=True)
    yoff = jnp.where(big, _PI_2, jnp.where(mid, _PI_4, jnp.float32(0.0)))
    z = xr * xr
    p = (((8.05374449538e-2 * z - 1.38776856032e-1) * z
          + 1.99777106478e-1) * z - 3.33329491539e-1)
    r = yoff + (p * z * xr + xr)
    sgn = jnp.where(x < 0.0, jnp.float32(-1.0), jnp.float32(1.0))
    return sgn * r


def _asin(x):
    # asin(x) = atan(x * rsqrt((1-x)(1+x)))
    #  * |x| > 1  -> rsqrt of negative -> NaN (matches torch.asin domain error)
    #  * |x| == 1 -> rsqrt(0) = inf -> atan(+/-inf) -> +/-pi/2
    inv = lax.rsqrt((1.0 - x) * (1.0 + x))
    return _atan(x * inv)


def _acos(x):
    return _PI_2 - _asin(x)


def _softplus(x):
    # torch.nn.Softplus(beta=1, threshold=20): x if x > 20 else log(1 + exp(x))
    return jnp.where(x > 20.0, x, jnp.log(1.0 + jnp.exp(jnp.minimum(x, 20.0))))


def trig_kernel(x_ref, o_ref):
    x = x_ref[...].astype(jnp.float32)
    sp = _softplus(x)
    c = jnp.cos(sp)
    s = jnp.sin(c)
    t = jnp.sin(s) / jnp.cos(s)          # tan(s); cos(s) >= cos(sin(1)) > 0.66
    a = _acos(t)                         # NaN where |t| > 1 (as in torch)
    b = _asin(a)                         # NaN where |a| > 1 (as in torch)
    # sign(abs(-tanh(atan(b)))) == {NaN if b is NaN, 1 if b != 0, 0 if b == 0}
    # (tanh∘atan is odd, strictly monotone, zero only at 0, NaN-preserving).
    y = jnp.where(b != b, b,             # b != b  <=>  isnan(b)
                  jnp.where(b != 0.0, jnp.float32(1.0), jnp.float32(0.0)))
    o_ref[...] = y.astype(o_ref.dtype)


def _cores_per_chip():
    """TensorCores exposed per JAX device (megacore chips -> 2)."""
    try:
        kind = (jax.devices()[0].device_kind or "").lower()
    except Exception:
        return 1
    if "lite" in kind:                   # v5e / v6e -> single TensorCore
        return 1
    for tag in ("v7", "v5p", "v4"):      # megacore: 2 TCs per JAX device
        if tag in kind:
            return 2
    return 1


def _pick_block_rows(rows, cores):
    """rows is a multiple of 8.  Single block on 1-TC chips when it fits;
    otherwise an even, balanced grid (multiple of `cores` blocks)."""
    if cores <= 1 and rows <= _MAX_BLOCK_ROWS:
        return rows
    n_blocks = cores * pl.cdiv(rows, cores * _MAX_BLOCK_ROWS)
    block_rows = pl.cdiv(pl.cdiv(rows, n_blocks), _SUB) * _SUB
    return max(_SUB, block_rows)


@jax.jit
def circuit_forward(x):
    orig_shape = x.shape
    orig_dtype = x.dtype
    flat = x.reshape(-1)                 # no dtype cast here: done in-kernel
    n = flat.shape[0]

    pad = (-n) % (_SUB * _LANES)
    if pad:
        flat = jnp.pad(flat, (0, pad))
    mat = flat.reshape(-1, _LANES)
    rows = mat.shape[0]

    cores = _cores_per_chip()
    block_rows = _pick_block_rows(rows, cores)
    grid = pl.cdiv(rows, block_rows)

    out = pl.pallas_call(
        trig_kernel,
        out_shape=jax.ShapeDtypeStruct(mat.shape, orig_dtype),
        grid=(grid,),
        in_specs=[pl.BlockSpec((block_rows, _LANES), lambda i: (i, 0))],
        out_specs=pl.BlockSpec((block_rows, _LANES), lambda i: (i, 0)),
        compiler_params=pltpu.CompilerParams(
            dimension_semantics=("parallel",),
            vmem_limit_bytes=_VMEM_LIMIT),
    )(mat)

    out_flat = out.reshape(-1)
    if pad:
        out_flat = out_flat[:n]
    return out_flat.reshape(orig_shape)


if __name__ == "__main__":
    key = jax.random.PRNGKey(0)
    # NCHW-shaped input: [B, C, H, W]
    x = jax.random.normal(key, (2, 4, 16, 16), dtype=jnp.float32) * 2.0

    y = circuit_forward(x)
    jax.block_until_ready(y)

    assert y.shape == x.shape and y.dtype == x.dtype

    # Non-NaN outputs of this chain must be 0.0 or 1.0.
    y_np = np.asarray(y)
    finite = y_np[~np.isnan(y_np)]
    assert np.all((finite == 0.0) | (finite == 1.0))

    print("KERNEL_OK")
</pallas_src>

<mosaic_0001>
module attributes {stable_mosaic.version = 11 : i64} {
  func.func @trig_kernel(%arg0: i32, %arg1: memref<16x128xf32, #tpu.memory_space<vmem>>, %arg2: memref<16x128xf32, #tpu.memory_space<vmem>>) attributes {dimension_semantics = [#tpu.dimension_semantics<parallel>], iteration_bounds = array<i64: 1>, scalar_prefetch = 0 : i64, scratch_operands = 0 : i64, tpu.core_type = #tpu.core_type<tc>, window_params = [{transform_indices = @transform_0, window_bounds = array<i64: 16, 128>}, {transform_indices = @transform_1, window_bounds = array<i64: 16, 128>}]} {
    %c0 = arith.constant 0 : index
    %c0_0 = arith.constant 0 : index
    %0 = vector.load %arg1[%c0, %c0_0] : memref<16x128xf32, #tpu.memory_space<vmem>>, vector<16x128xf32>
    %cst = arith.constant 2.000000e+01 : f32
    %1 = vector.broadcast %cst : f32 to vector<16x128xf32>
    %2 = arith.cmpf ogt, %0, %1 : vector<16x128xf32>
    %cst_1 = arith.constant 2.000000e+01 : f32
    %3 = vector.broadcast %cst_1 : f32 to vector<16x128xf32>
    %4 = arith.minimumf %0, %3 : vector<16x128xf32>
    %5 = math.exp %4 : vector<16x128xf32>
    %cst_2 = arith.constant 1.000000e+00 : f32
    %6 = vector.broadcast %cst_2 : f32 to vector<16x128xf32>
    %7 = arith.addf %6, %5 : vector<16x128xf32>
    %8 = math.log %7 : vector<16x128xf32>
    %9 = arith.select %2, %0, %8 : vector<16x128xi1>, vector<16x128xf32>
    %10 = math.cos %9 : vector<16x128xf32>
    %11 = math.sin %10 : vector<16x128xf32>
    %12 = math.sin %11 : vector<16x128xf32>
    %13 = math.cos %11 : vector<16x128xf32>
    %14 = arith.divf %12, %13 : vector<16x128xf32>
    %cst_3 = arith.constant 1.000000e+00 : f32
    %15 = vector.broadcast %cst_3 : f32 to vector<16x128xf32>
    %16 = arith.subf %15, %14 : vector<16x128xf32>
    %cst_4 = arith.constant 1.000000e+00 : f32
    %17 = vector.broadcast %cst_4 : f32 to vector<16x128xf32>
    %18 = arith.addf %17, %14 : vector<16x128xf32>
    %19 = arith.mulf %16, %18 : vector<16x128xf32>
    %20 = math.rsqrt %19 : vector<16x128xf32>
    %21 = arith.mulf %14, %20 : vector<16x128xf32>
    %22 = math.absf %21 : vector<16x128xf32>
    %cst_5 = arith.constant 2.41421366 : f32
    %23 = vector.broadcast %cst_5 : f32 to vector<16x128xf32>
    %24 = arith.cmpf ogt, %22, %23 : vector<16x128xf32>
    %cst_6 = arith.constant 0.414213568 : f32
    %25 = vector.broadcast %cst_6 : f32 to vector<16x128xf32>
    %26 = arith.cmpf ogt, %22, %25 : vector<16x128xf32>
    %cst_7 = arith.constant 1.000000e+00 : f32
    %27 = vector.broadcast %cst_7 : f32 to vector<16x128xf32>
    %28 = arith.subf %22, %27 : vector<16x128xf32>
    %29 = arith.select %26, %28, %22 : vector<16x128xi1>, vector<16x128xf32>
    %cst_8 = arith.constant -1.000000e+00 : f32
    %30 = vector.broadcast %cst_8 : f32 to vector<16x128xf32>
    %31 = arith.select %24, %30, %29 : vector<16x128xi1>, vector<16x128xf32>
    %cst_9 = arith.constant 1.000000e+00 : f32
    %32 = vector.broadcast %cst_9 : f32 to vector<16x128xf32>
    %33 = arith.addf %22, %32 : vector<16x128xf32>
    %cst_10 = arith.constant 1.000000e+00 : f32
    %34 = vector.broadcast %cst_10 : f32 to vector<16x128xf32>
    %35 = arith.select %26, %33, %34 : vector<16x128xi1>, vector<16x128xf32>
    %36 = arith.select %24, %22, %35 : vector<16x128xi1>, vector<16x128xf32>
    %37 = tpu.reciprocal %36 {approx = true} : vector<16x128xf32> -> vector<16x128xf32>
    %38 = arith.mulf %31, %37 : vector<16x128xf32>
    %cst_11 = arith.constant 0.785398185 : f32
    %cst_12 = arith.constant 0.000000e+00 : f32
    %39 = vector.broadcast %cst_11 : f32 to vector<16x128xf32>
    %40 = vector.broadcast %cst_12 : f32 to vector<16x128xf32>
    %41 = arith.select %26, %39, %40 : vector<16x128xi1>, vector<16x128xf32>
    %cst_13 = arith.constant 1.57079637 : f32
    %42 = vector.broadcast %cst_13 : f32 to vector<16x128xf32>
    %43 = arith.select %24, %42, %41 : vector<16x128xi1>, vector<16x128xf32>
    %44 = arith.mulf %38, %38 : vector<16x128xf32>
    %cst_14 = arith.constant 0.0805374458 : f32
    %45 = vector.broadcast %cst_14 : f32 to vector<16x128xf32>
    %46 = arith.mulf %45, %44 : vector<16x128xf32>
    %cst_15 = arith.constant 0.138776854 : f32
    %47 = vector.broadcast %cst_15 : f32 to vector<16x128xf32>
    %48 = arith.subf %46, %47 : vector<16x128xf32>
    %49 = arith.mulf %48, %44 : vector<16x128xf32>
    %cst_16 = arith.constant 0.199777111 : f32
    %50 = vector.broadcast %cst_16 : f32 to vector<16x128xf32>
    %51 = arith.addf %49, %50 : vector<16x128xf32>
    %52 = arith.mulf %51, %44 : vector<16x128xf32>
    %cst_17 = arith.constant 0.333329499 : f32
    %53 = vector.broadcast %cst_17 : f32 to vector<16x128xf32>
    %54 = arith.subf %52, %53 : vector<16x128xf32>
    %55 = arith.mulf %54, %44 : vector<16x128xf32>
    %56 = arith.mulf %55, %38 : vector<16x128xf32>
    %57 = arith.addf %56, %38 : vector<16x128xf32>
    %58 = arith.addf %43, %57 : vector<16x128xf32>
    %cst_18 = arith.constant 0.000000e+00 : f32
    %59 = vector.broadcast %cst_18 : f32 to vector<16x128xf32>
    %60 = arith.cmpf olt, %21, %59 : vector<16x128xf32>
    %cst_19 = arith.constant -1.000000e+00 : f32
    %cst_20 = arith.constant 1.000000e+00 : f32
    %61 = vector.broadcast %cst_19 : f32 to vector<16x128xf32>
    %62 = vector.broadcast %cst_20 : f32 to vector<16x128xf32>
    %63 = arith.select %60, %61, %62 : vector<16x128xi1>, vector<16x128xf32>
    %64 = arith.mulf %63, %58 : vector<16x128xf32>
    %cst_21 = arith.constant 1.57079637 : f32
    %65 = vector.broadcast %cst_21 : f32 to vector<16x128xf32>
    %66 = arith.subf %65, %64 : vector<16x128xf32>
    %cst_22 = arith.constant 1.000000e+00 : f32
    %67 = vector.broadcast %cst_22 : f32 to vector<16x128xf32>
    %68 = arith.subf %67, %66 : vector<16x128xf32>
    %cst_23 = arith.constant 1.000000e+00 : f32
    %69 = vector.broadcast %cst_23 : f32 to vector<16x128xf32>
    %70 = arith.addf %69, %66 : vector<16x128xf32>
    %71 = arith.mulf %68, %70 : vector<16x128xf32>
    %72 = math.rsqrt %71 : vector<16x128xf32>
    %73 = arith.mulf %66, %72 : vector<16x128xf32>
    %74 = math.absf %73 : vector<16x128xf32>
    %cst_24 = arith.constant 2.41421366 : f32
    %75 = vector.broadcast %cst_24 : f32 to vector<16x128xf32>
    %76 = arith.cmpf ogt, %74, %75 : vector<16x128xf32>
    %cst_25 = arith.constant 0.414213568 : f32
    %77 = vector.broadcast %cst_25 : f32 to vector<16x128xf32>
    %78 = arith.cmpf ogt, %74, %77 : vector<16x128xf32>
    %cst_26 = arith.constant 1.000000e+00 : f32
    %79 = vector.broadcast %cst_26 : f32 to vector<16x128xf32>
    %80 = arith.subf %74, %79 : vector<16x128xf32>
    %81 = arith.select %78, %80, %74 : vector<16x128xi1>, vector<16x128xf32>
    %cst_27 = arith.constant -1.000000e+00 : f32
    %82 = vector.broadcast %cst_27 : f32 to vector<16x128xf32>
    %83 = arith.select %76, %82, %81 : vector<16x128xi1>, vector<16x128xf32>
    %cst_28 = arith.constant 1.000000e+00 : f32
    %84 = vector.broadcast %cst_28 : f32 to vector<16x128xf32>
    %85 = arith.addf %74, %84 : vector<16x128xf32>
    %cst_29 = arith.constant 1.000000e+00 : f32
    %86 = vector.broadcast %cst_29 : f32 to vector<16x128xf32>
    %87 = arith.select %78, %85, %86 : vector<16x128xi1>, vector<16x128xf32>
    %88 = arith.select %76, %74, %87 : vector<16x128xi1>, vector<16x128xf32>
    %89 = tpu.reciprocal %88 {approx = true} : vector<16x128xf32> -> vector<16x128xf32>
    %90 = arith.mulf %83, %89 : vector<16x128xf32>
    %cst_30 = arith.constant 0.785398185 : f32
    %cst_31 = arith.constant 0.000000e+00 : f32
    %91 = vector.broadcast %cst_30 : f32 to vector<16x128xf32>
    %92 = vector.broadcast %cst_31 : f32 to vector<16x128xf32>
    %93 = arith.select %78, %91, %92 : vector<16x128xi1>, vector<16x128xf32>
    %cst_32 = arith.constant 1.57079637 : f32
    %94 = vector.broadcast %cst_32 : f32 to vector<16x128xf32>
    %95 = arith.select %76, %94, %93 : vector<16x128xi1>, vector<16x128xf32>
    %96 = arith.mulf %90, %90 : vector<16x128xf32>
    %cst_33 = arith.constant 0.0805374458 : f32
    %97 = vector.broadcast %cst_33 : f32 to vector<16x128xf32>
    %98 = arith.mulf %97, %96 : vector<16x128xf32>
    %cst_34 = arith.constant 0.138776854 : f32
    %99 = vector.broadcast %cst_34 : f32 to vector<16x128xf32>
    %100 = arith.subf %98, %99 : vector<16x128xf32>
    %101 = arith.mulf %100, %96 : vector<16x128xf32>
    %cst_35 = arith.constant 0.199777111 : f32
    %102 = vector.broadcast %cst_35 : f32 to vector<16x128xf32>
    %103 = arith.addf %101, %102 : vector<16x128xf32>
    %104 = arith.mulf %103, %96 : vector<16x128xf32>
    %cst_36 = arith.constant 0.333329499 : f32
    %105 = vector.broadcast %cst_36 : f32 to vector<16x128xf32>
    %106 = arith.subf %104, %105 : vector<16x128xf32>
    %107 = arith.mulf %106, %96 : vector<16x128xf32>
    %108 = arith.mulf %107, %90 : vector<16x128xf32>
    %109 = arith.addf %108, %90 : vector<16x128xf32>
    %110 = arith.addf %95, %109 : vector<16x128xf32>
    %cst_37 = arith.constant 0.000000e+00 : f32
    %111 = vector.broadcast %cst_37 : f32 to vector<16x128xf32>
    %112 = arith.cmpf olt, %73, %111 : vector<16x128xf32>
    %cst_38 = arith.constant -1.000000e+00 : f32
    %cst_39 = arith.constant 1.000000e+00 : f32
    %113 = vector.broadcast %cst_38 : f32 to vector<16x128xf32>
    %114 = vector.broadcast %cst_39 : f32 to vector<16x128xf32>
    %115 = arith.select %112, %113, %114 : vector<16x128xi1>, vector<16x128xf32>
    %116 = arith.mulf %115, %110 : vector<16x128xf32>
    %117 = arith.cmpf one, %116, %116 : vector<16x128xf32>
    %cst_40 = arith.constant 0.000000e+00 : f32
    %118 = vector.broadcast %cst_40 : f32 to vector<16x128xf32>
    %119 = arith.cmpf one, %116, %118 : vector<16x128xf32>
    %cst_41 = arith.constant 1.000000e+00 : f32
    %cst_42 = arith.constant 0.000000e+00 : f32
    %120 = vector.broadcast %cst_41 : f32 to vector<16x128xf32>
    %121 = vector.broadcast %cst_42 : f32 to vector<16x128xf32>
    %122 = arith.select %119, %120, %121 : vector<16x128xi1>, vector<16x128xf32>
    %123 = arith.select %117, %116, %122 : vector<16x128xi1>, vector<16x128xf32>
    %c0_43 = arith.constant 0 : index
    %c0_44 = arith.constant 0 : index
    %124 = vector.load %arg2[%c0_43, %c0_44] : memref<16x128xf32, #tpu.memory_space<vmem>>, vector<16x128xf32>
    tpu.vector_store %arg2[%c0_43, %c0_44], %123 {strides = array<i32>} : memref<16x128xf32, #tpu.memory_space<vmem>>, vector<16x128xf32>,
    return
  }
  func.func @transform_0(%arg0: i32) -> (i32, i32) {
    %c0_i32 = arith.constant 0 : i32
    %c0_i32_0 = arith.constant 0 : i32
    return %arg0, %c0_i32 : i32, i32
  }
  func.func @transform_1(%arg0: i32) -> (i32, i32) {
    %c0_i32 = arith.constant 0 : i32
    %c0_i32_0 = arith.constant 0 : i32
    return %arg0, %c0_i32 : i32, i32
  }
}

</mosaic_0001>

<bundles_post_ra>
// kernel: circuit_forward.1
= control target key start
LH: loop header
LB: loop body
LE: loop exit
PB: predicated region body
PF: predicated region fallthrough
CT: control target
= control target key end

     0   :  { %v1130_v38 = vmov 683565275   ;;  %v1131_v40 = vmov 2475754826   ;;  %v1132_v42 = vmov 2131351028   ;;  %s1466_s0 = inlined_call_operand.vmem [shape: f32[16,128], index: 0, kind: input, shape index: {}]   ;;  %s1467_s1 = inlined_call_operand.vmem [shape: f32[16,128], index: 1, kind: output, shape index: {}]  }
   0x1   :  { %v8_v0 = vld [vmem:[%s1466_s0] sm:$0xff]  ;;  %v9_v1 = vld [vmem:[%s1466_s0 + $0x8] sm:$0xff]  ;;  %v1133_v44 = vmov 2102212464   ;;  %v1134_v46 = vmov 920167782  }
   0x2   :  { %v12_v2 = vmin.f32 %v8_v0, 20.0  ;;  %v13_v3 = vmin.f32 %v9_v1, 20.0  ;;  %vm10_vm0 = vcmp.gt.f32.partialorder %v8_v0, 20.0  ;;  %vm11_vm1 = vcmp.gt.f32.partialorder %v9_v1, 20.0 }
   0x3   :  { %v1135_v54 = vmov 1326507024  }
   0x4   :  { %v14_v4 = vmul.f32 1.442695, %v12_v2  ;;  %v16_v5 = vmul.f32 1.442695, %v13_v3 }
   0x6   :  { %1078 = vpow2.f32 %v14_v4 }
   0x7   :  { %1080 = vpow2.f32 %v16_v5 }
  0x10   :  { %v1079_v6 = vpop.eup %1078 }
  0x11   :  { %v1081_v7 = vpop.eup %1080  ;;  %v18_v8 = vadd.f32 1.0, %v1079_v6 }
  0x12   :  { %v19_v9 = vadd.f32 1.0, %v1081_v7 }
  0x13   :  { %1082 = vlog2.f32 %v18_v8 }
  0x14   :  { %1084 = vlog2.f32 %v19_v9 }
  0x1d   :  { %v1083_v10 = vpop.eup %1082 }
  0x1e   :  { %v1085_v11 = vpop.eup %1084  ;;  %v21_v12 = vmul.f32 0.6931472, %v1083_v10 }
  0x1f   :  { %v23_v13 = vmul.f32 0.6931472, %v1085_v11 }
  0x20   :  { %v1154_v14 = vsel %vm10_vm0, %v8_v0, %v21_v12 }
  0x21   :  { %v1156_v15 = vsel %vm11_vm1, %v9_v1, %v23_v13  ;;  %v26_v16 = vand.u32 2147483647, %v1154_v14  ;;  %v29_v17 = vand.u32 2139095040, %v1154_v14  ;;  %vm28_vm0 = vcmp.lt.s32.totalorder %v1154_v14, 0 }
  0x22   :  { %v129_v18 = vand.u32 2147483647, %v1156_v15  ;;  %v132_v19 = vand.u32 2139095040, %v1156_v15 }
  0x23   :  { %v30_v20 = vshrl.u32 %v29_v17, 23  ;;  %v33_v21 = vand.u32 8388607, %v26_v16  ;;  %vm1239_vm1 = vcmp.le.f32.partialorder %v26_v16, 0.7853982 }
  0x24   :  { %v133_v22 = vshrl.u32 %v132_v19, 23  ;;  %v136_v23 = vand.u32 8388607, %v129_v18 }
  0x25   :  { %v1002_v24 = vadd.s32 4294967169, %v30_v20  ;;  %v34_v27 = vor.u32 8388608, %v33_v21 }
  0x26   :  { %v1006_v25 = vadd.s32 4294967169, %v133_v22  ;;  %v137_v28 = vor.u32 8388608, %v136_v23 }
  0x27   :  { %v36_v26 = vadd.s32 1, %v1002_v24  ;;  %v1166_v34 = vshll.u32 %v34_v27, 8 }
  0x28   :  { %v139_v29 = vadd.s32 1, %v1006_v25  ;;  %v1168_v36 = vshll.u32 %v137_v28, 8 }
  0x29   :  { %vm37_vm2 = vcmp.gt.s32.totalorder %v36_v26, 0 }
  0x2a   :  { %v38_v30 = vsel %vm37_vm2, %v36_v26, 0  ;;  %vm140_vm3 = vcmp.gt.s32.totalorder %v139_v29, 0  ;;  %vm131_vm2 = vcmp.lt.s32.totalorder %v1156_v15, 0 }
  0x2b   :  { %v39_v31 = vshrl.u32 %v38_v30, 5  ;;  %v40_v32 = vand.u32 31, %v38_v30  ;;  %v141_v33 = vsel %vm140_vm3, %v139_v29, 0  ;;  %vm1251_vm3 = vcmp.le.f32.partialorder %v129_v18, 0.7853982 }
  0x2c   :  { %v143_v35 = vand.u32 31, %v141_v33  ;;  %v1175_v48 = vshrl.u32 %v141_v33, 5 }
  0x2d   :  { %v41_v37 = vsub.s32 32, %v40_v32  ;;  %v43_v39 = vshll.u32 %v1130_v38, %v40_v32  ;;  %v46_v41 = vshll.u32 %v1131_v40, %v40_v32  ;;  %v49_v43 = vshll.u32 %v1132_v42, %v40_v32 }
  0x2e   :  { %v52_v45 = vshll.u32 %v1133_v44, %v40_v32  ;;  %v55_v47 = vshll.u32 %v1134_v46, %v40_v32  ;;  %vm58_vm4 = vcmp.lt.s32.totalorder %v39_v31, 1  ;;  %vm59_vm5 = vcmp.lt.s32.totalorder %v39_v31, 2 }
  0x2f   :  { %v42_v49 = vshrl.u32 %v1130_v38, %v41_v37  ;;  %v44_v50 = vshrl.u32 %v1131_v40, %v41_v37  ;;  %v47_v51 = vshrl.u32 %v1132_v42, %v41_v37  ;;  %v50_v52 = vshrl.u32 %v1133_v44, %v41_v37 }
  0x30   :  { %v53_v53 = vshrl.u32 %v1134_v46, %v41_v37  ;;  %v56_v55 = vshrl.u32 %v1135_v54, %v41_v37  ;;  %vm61_vm6 = vcmp.lt.s32.totalorder %v39_v31, 4  ;;  %v144_v59 = vsub.s32 32, %v143_v35 }
  0x31   :  { %v45_v56 = vor.u32 %v44_v50, %v43_v39  ;;  %v48_v57 = vor.u32 %v47_v51, %v46_v41  ;;  %v51_v58 = vor.u32 %v50_v52, %v49_v43  ;;  %vm60_vm7 = vcmp.lt.s32.totalorder %v39_v31, 3 }
  0x32   :  { %v54_v60 = vor.u32 %v53_v53, %v52_v45  ;;  %v57_v61 = vor.u32 %v56_v55, %v55_v47  ;;  %v146_v62 = vshll.u32 %v1130_v38, %v143_v35  ;;  %v149_v6 = vshll.u32 %v1131_v40, %v143_v35 }
  0x33   :  { %v62_v63 = vsel %vm58_vm4, %v42_v49, %v45_v56  ;;  %v63_v0 = vsel %vm61_vm6, %v51_v58, 2102212464  ;;  %v66_v1 = vsel %vm58_vm4, %v45_v56, %v48_v57  ;;  %v70_v2 = vsel %vm58_vm4, %v48_v57, %v51_v58 }
  0x34   :  { %v64_v3 = vsel %vm60_vm7, %v48_v57, %v63_v0  ;;  %v67_v4 = vsel %vm61_vm6, %v54_v60, 920167782  ;;  %v71_v5 = vsel %vm61_vm6, %v57_v61, 1326507024  ;;  %v145_v9 = vshrl.u32 %v1130_v38, %v144_v59 }
  0x35   :  { %v68_v7 = vsel %vm60_vm7, %v51_v58, %v67_v4  ;;  %v72_v8 = vsel %vm60_vm7, %v54_v60, %v71_v5  ;;  %v147_v10 = vshrl.u32 %v1131_v40, %v144_v59  ;;  %v65_v11 = vsel %vm59_vm5, %v62_v63, %v64_v3 }
  0x36   :  { %v69_v12 = vsel %vm59_vm5, %v66_v1, %v68_v7  ;;  %v73_v13 = vsel %vm59_vm5, %v70_v2, %v72_v8  ;;  %v150_v17 = vshrl.u32 %v1132_v42, %v144_v59  ;;  %v152_v25 = vshll.u32 %v1132_v42, %v143_v35 }
  0x37   :  { %v1195_v19 = vmul.u32.u64.low %v1166_v34, %v73_v13  ;;  %v1196_v20 = vmul.u32.u64.high %v1166_v34, %v73_v13, %v1195_v19  ;;  %v1199_v21 = vmul.u32.u64.low %v1166_v34, %v69_v12  ;;  %v1200_v22 = vmul.u32.u64.high %v1166_v34, %v69_v12, %v1199_v21 }
  0x38   :  { %v148_v23 = vor.u32 %v147_v10, %v146_v62  ;;  %v151_v24 = vor.u32 %v150_v17, %v149_v6  ;;  %v153_v26 = vshrl.u32 %v1133_v44, %v144_v59  ;;  %v155_v27 = vshll.u32 %v1133_v44, %v143_v35 }
  0x39   :  { %v156_v28 = vshrl.u32 %v1134_v46, %v144_v59  ;;  %v158_v29 = vshll.u32 %v1134_v46, %v143_v35  ;;  %v159_v30 = vshrl.u32 %v1135_v54, %v144_v59  ;;  %v81_v31 = vmul.u32 %v1166_v34, %v65_v11 }
  0x3a   :  { %v154_v32 = vor.u32 %v153_v26, %v152_v25  ;;  %vm161_vm8 = vcmp.lt.s32.totalorder %v1175_v48, 1  ;;  %vm162_vm9 = vcmp.lt.s32.totalorder %v1175_v48, 2  ;;  %vm83_vm10 = vc.u32 %v1196_v20, %v1199_v21 }
  0x3b   :  { %v84_v33 = vadd.s32 1, %v1200_v22  ;;  %v157_v37 = vor.u32 %v156_v28, %v155_v27  ;;  %vm163_vm11 = vcmp.lt.s32.totalorder %v1175_v48, 3  ;;  %v160_v39 = vor.u32 %v159_v30, %v158_v29 }
  0x3c   :  { %vm164_vm12 = vcmp.lt.s32.totalorder %v1175_v48, 4  ;;  %v165_v35 = vsel %vm161_vm8, %v145_v9, %v148_v23  ;;  %v169_v41 = vsel %vm161_vm8, %v148_v23, %v151_v24  ;;  %v173_v47 = vsel %vm161_vm8, %v151_v24, %v154_v32 }
  0x3d   :  { %v85_v43 = vsel %vm83_vm10, %v84_v33, %v1200_v22  ;;  %v166_v34 = vsel %vm164_vm12, %v154_v32, 2102212464  ;;  %v170_v45 = vsel %vm164_vm12, %v157_v37, 920167782  ;;  %v174_v52 = vsel %vm164_vm12, %v160_v39, 1326507024 }
  0x3e   :  { %v86_v49 = vadd.s32 %v85_v43, %v81_v31  ;;  %v167_v50 = vsel %vm163_vm11, %v151_v24, %v166_v34  ;;  %v171_v51 = vsel %vm163_vm11, %v154_v32, %v170_v45  ;;  %v175_v56 = vsel %vm163_vm11, %v157_v37, %v174_v52 }
  0x3f   :  { %v168_v53 = vsel %vm162_vm9, %v165_v35, %v167_v50  ;;  %v172_v55 = vsel %vm162_vm9, %v169_v41, %v171_v51  ;;  %v176_v58 = vsel %vm162_vm9, %v173_v47, %v175_v56  ;;  %v82_v13 = vadd.s32 %v1199_v21, %v1196_v20 }
  0x40   :  { %v87_v57 = vadd.s32 536870912, %v86_v49  ;;  %v1223_v59 = vmul.u32.u64.low %v1168_v36, %v172_v55  ;;  %v1224_v60 = vmul.u32.u64.high %v1168_v36, %v172_v55, %v1223_v59  ;;  %v184_v0 = vmul.u32 %v1168_v36, %v168_v53 }
  0x41   :  { %v1227_v61 = vmul.u32.u64.low %v1168_v36, %v176_v58  ;;  %v1228_v62 = vmul.u32.u64.high %v1168_v36, %v176_v58, %v1227_v61  ;;  %vm118_vm7 = vweird.f32 %v1154_v14  ;;  %vm221_vm11 = vweird.f32 %v1156_v15 }
  0x42   :  { %v88_v63 = vshrl.u32 %v87_v57, 30  ;;  %v187_v2 = vadd.s32 1, %v1224_v60 }
  0x43   :  { %vm186_vm13 = vc.u32 %v1228_v62, %v1223_v59  ;;  %v185_v33 = vadd.s32 %v1223_v59, %v1228_v62 }
  0x44   :  { %v89_v1 = vshll.u32 %v88_v63, 30  ;;  %v188_v48 = vsel %vm186_vm13, %v187_v2, %v1224_v60 }
  0x45   :  { %v189_v4 = vadd.s32 %v188_v48, %v184_v0 }
  0x46   :  { %v90_v3 = vsub.s32 %v86_v49, %v89_v1  ;;  %v112_v49 = vsub.s32 4, %v88_v63 }
  0x47   :  { %v190_v6 = vadd.s32 536870912, %v189_v4 }
  0x48   :  { %v92_v5 = vsub.s32 0, %v90_v3  ;;  %v113_v57 = vsel %vm28_vm0, %v112_v49, %v88_v63 }
  0x49   :  { %v191_v8 = vshrl.u32 %v190_v6, 30  ;;  %v115_v16 = vsel %vm1239_vm1, 0, %v113_v57 }
  0x4a   :  { %v1003_v7 = vmin.u32 %v92_v5, %v90_v3  ;;  %v119_v0 = vand.u32 3, %v115_v16 }
  0x4b   :  { %v192_v10 = vshll.u32 %v191_v8, 30  ;;  %v215_v62 = vsub.s32 4, %v191_v8 }
  0x4c   :  { %v94_v9 = vclz %v1003_v7  ;;  %vm124_vm4 = vcmp.eq.s32.totalorder %v119_v0, 2  ;;  %vm121_vm5 = vcmp.eq.s32.totalorder %v119_v0, 0  ;;  %vm120_vm6 = vcmp.lt.s32.totalorder %v119_v0, 2 }
  0x4d   :  { %v193_v12 = vsub.s32 %v189_v4, %v192_v10  ;;  %v216_v2 = vsel %vm131_vm2, %v215_v62, %v191_v8 }
  0x4e   :  { %v1004_v11 = vadd.s32 4294967294, %v94_v9  ;;  %v218_v5 = vsel %vm1251_vm3, 0, %v216_v2 }
  0x4f   :  { %v195_v17 = vsub.s32 0, %v193_v12  ;;  %v222_v10 = vand.u32 3, %v218_v5 }
  0x50   :  { %vm1005_vm14 = vcmp.lt.s32.totalorder %v1004_v11, 0 }
  0x51   :  { %v97_v36 = vsel %vm1005_vm14, 0, %v1004_v11  ;;  %v1007_v24 = vmin.u32 %v195_v17, %v193_v12  ;;  %vm227_vm8 = vcmp.eq.s32.totalorder %v222_v10, 2  ;;  %vm224_vm9 = vcmp.eq.s32.totalorder %v222_v10, 0 }
  0x52   :  { %v98_v19 = vsub.s32 32, %v97_v36  ;;  %v99_v22 = vshll.u32 %v90_v3, %v97_v36  ;;  %v102_v23 = vsub.s32 4294967266, %v97_v36  ;;  %vm223_vm10 = vcmp.lt.s32.totalorder %v222_v10, 2 }
  0x53   :  { %v197_v27 = vclz %v1007_v24 }
  0x54   :  { %v100_v25 = vshrl.u32 %v82_v13, %v98_v19  ;;  %v103_v26 = vadd.s32 127, %v102_v23 }
  0x55   :  { %v1008_v30 = vadd.s32 4294967294, %v197_v27 }
  0x56   :  { %v101_v28 = vor.u32 %v100_v25, %v99_v22  ;;  %v104_v29 = vshll.u32 %v103_v26, 23 }
  0x57   :  { %vm1009_vm15 = vcmp.lt.s32.totalorder %v1008_v30, 0 }
  0x58   :  { %v105_v31 = vor.u32 4788187, %v104_v29  ;;  %v108_v32 = vcvt.s32.f32 %v101_v28  ;;  %v200_v20 = vsel %vm1009_vm15, 0, %v1008_v30 }
  0x59   :  { %v201_v21 = vsub.s32 32, %v200_v20  ;;  %v202_v39 = vshll.u32 %v193_v12, %v200_v20  ;;  %v205_v35 = vsub.s32 4294967266, %v200_v20 }
  0x5a   :  { %v106_v37 = vand.u32 2147483647, %v105_v31 }
  0x5b   :  { %v203_v43 = vshrl.u32 %v185_v33, %v201_v21  ;;  %v206_v34 = vadd.s32 127, %v205_v35 }
  0x5c   :  { %v109_v41 = vmul.f32 %v108_v32, %v106_v37 }
  0x5d   :  { %v204_v50 = vor.u32 %v203_v43, %v202_v39  ;;  %v207_v51 = vshll.u32 %v206_v34, 23 }
  0x5e   :  { %v110_v47 = vxor.u32 2147483648, %v109_v41 }
  0x5f   :  { %v208_v55 = vor.u32 4788187, %v207_v51  ;;  %v211_v56 = vcvt.s32.f32 %v204_v50 }
  0x60   :  { %v111_v52 = vsel %vm28_vm0, %v110_v47, %v109_v41 }
  0x61   :  { %v114_v53 = vsel %vm1239_vm1, %v1154_v14, %v111_v52  ;;  %v209_v58 = vand.u32 2147483647, %v208_v55 }
  0x62   :  { %1086 = vcosq.f32 %v114_v53 }
  0x63   :  { %1088 = vsinq.f32 %v114_v53  ;;  %v212_v59 = vmul.f32 %v211_v56, %v209_v58 }
  0x65   :  { %v213_v61 = vxor.u32 2147483648, %v212_v59 }
  0x67   :  { %v214_v1 = vsel %vm131_vm2, %v213_v61, %v212_v59 }
  0x68   :  { %v217_v63 = vsel %vm1251_vm3, %v1156_v15, %v214_v1 }
  0x69   :  { %1090 = vcosq.f32 %v217_v63 }
  0x6a   :  { %1092 = vsinq.f32 %v217_v63 }
  0x6c   :  { %v1087_v3 = vpop.eup %1086 }
  0x6d   :  { %v1089_v48 = vpop.eup %1088  ;;  %v125_v4 = vxor.u32 2147483648, %v1087_v3 }
  0x6e   :  { %v122_v18 = vxor.u32 2147483648, %v1089_v48 }
  0x6f   :  { %v126_v6 = vsel %vm124_vm4, %v125_v4, %v1089_v48 }
  0x70   :  { %v123_v7 = vsel %vm121_vm5, %v1087_v3, %v122_v18 }
  0x71   :  { %v127_v9 = vsel %vm120_vm6, %v123_v7, %v126_v6 }
  0x72   :  { %v1261_v11 = vsel %vm118_vm7, nan, %v127_v9 }
  0x73   :  { %v235_v8 = vand.u32 2139095040, %v1261_v11  ;;  %v232_v12 = vand.u32 2147483647, %v1261_v11  ;;  %v1091_v13 = vpop.eup %1090 }
  0x74   :  { %v1093_v17 = vpop.eup %1092  ;;  %v228_v19 = vxor.u32 2147483648, %v1091_v13 }
  0x75   :  { %v236_v36 = vshrl.u32 %v235_v8, 23  ;;  %v225_v22 = vxor.u32 2147483648, %v1093_v17  ;;  %v239_v24 = vand.u32 8388607, %v232_v12 }
  0x76   :  { %v229_v14 = vsel %vm227_vm8, %v228_v19, %v1093_v17 }
  0x77   :  { %v1010_v23 = vadd.s32 4294967169, %v236_v36  ;;  %v226_v25 = vsel %vm224_vm9, %v1091_v13, %v225_v22  ;;  %v240_v29 = vor.u32 8388608, %v239_v24  ;;  %vm234_vm9 = vcmp.lt.s32.totalorder %v1261_v11, 0 }
  0x78   :  { %v230_v27 = vsel %vm223_vm10, %v226_v25, %v229_v14  ;;  %vm233_vm10 = vcmp.le.f32.partialorder %v232_v12, 0.7853982 }
  0x79   :  { %v242_v26 = vadd.s32 1, %v1010_v23  ;;  %v1268_v28 = vsel %vm221_vm11, nan, %v230_v27  ;;  %v280_v43 = vshll.u32 %v240_v29, 8 }
  0x7a   :  { %v339_v31 = vand.u32 2139095040, %v1268_v28  ;;  %v336_v34 = vand.u32 2147483647, %v1268_v28 }
  0x7b   :  { %vm243_vm12 = vcmp.gt.s32.totalorder %v242_v26, 0 }
  0x7c   :  { %v244_v30 = vsel %vm243_vm12, %v242_v26, 0  ;;  %v340_v37 = vshrl.u32 %v339_v31, 23  ;;  %v343_v4 = vand.u32 8388607, %v336_v34 }
  0x7d   :  { %v246_v32 = vand.u32 31, %v244_v30  ;;  %v245_v33 = vshrl.u32 %v244_v30, 5 }
  0x7e   :  { %v1014_v57 = vadd.s32 4294967169, %v340_v37  ;;  %v344_v36 = vor.u32 8388608, %v343_v4 }
  0x7f   :  { %v247_v20 = vsub.s32 32, %v246_v32  ;;  %v249_v15 = vshll.u32 %v1130_v38, %v246_v32  ;;  %v252_v21 = vshll.u32 %v1131_v40, %v246_v32  ;;  %v255_v39 = vshll.u32 %v1132_v42, %v246_v32 }
  0x80   :  { %v258_v35 = vshll.u32 %v1133_v44, %v246_v32  ;;  %v261_v41 = vshll.u32 %v1134_v46, %v246_v32  ;;  %vm264_vm13 = vcmp.lt.s32.totalorder %v245_v33, 1  ;;  %vm267_vm14 = vcmp.lt.s32.totalorder %v245_v33, 4 }
  0x81   :  { %v248_v45 = vshrl.u32 %v1130_v38, %v247_v20  ;;  %v250_v47 = vshrl.u32 %v1131_v40, %v247_v20  ;;  %v253_v49 = vshrl.u32 %v1132_v42, %v247_v20  ;;  %v256_v50 = vshrl.u32 %v1133_v44, %v247_v20 }
  0x82   :  { %v259_v51 = vshrl.u32 %v1134_v46, %v247_v20  ;;  %v262_v52 = vshrl.u32 %v1135_v54, %v247_v20  ;;  %vm265_vm15 = vcmp.lt.s32.totalorder %v245_v33, 2  ;;  %vm266_vm0 = vcmp.lt.s32.totalorder %v245_v33, 3 }
  0x83   :  { %v251_v53 = vor.u32 %v250_v47, %v249_v15  ;;  %v254_v55 = vor.u32 %v253_v49, %v252_v21  ;;  %v257_v56 = vor.u32 %v256_v50, %v255_v39  ;;  %v346_v2 = vadd.s32 1, %v1014_v57 }
  0x84   :  { %v260_v58 = vor.u32 %v259_v51, %v258_v35  ;;  %v263_v16 = vor.u32 %v262_v52, %v261_v41  ;;  %v384_v32 = vshll.u32 %v344_v36, 8 }
  0x85   :  { %v268_v59 = vsel %vm264_vm13, %v248_v45, %v251_v53  ;;  %v269_v60 = vsel %vm267_vm14, %v257_v56, 2102212464  ;;  %v272_v61 = vsel %vm264_vm13, %v251_v53, %v254_v55  ;;  %v276_v62 = vsel %vm264_vm13, %v254_v55, %v257_v56 }
  0x86   :  { %v270_v0 = vsel %vm266_vm0, %v254_v55, %v269_v60  ;;  %v273_v1 = vsel %vm267_vm14, %v260_v58, 920167782  ;;  %v277_v63 = vsel %vm267_vm14, %v263_v16, 1326507024  ;;  %vm347_vm1 = vcmp.gt.s32.totalorder %v346_v2, 0 }
  0x87   :  { %v274_v3 = vsel %vm266_vm0, %v257_v56, %v273_v1  ;;  %v278_v48 = vsel %vm266_vm0, %v260_v58, %v277_v63  ;;  %v271_v18 = vsel %vm265_vm15, %v268_v59, %v270_v0  ;;  %v348_v13 = vsel %vm347_vm1, %v346_v2, 0 }
  0x88   :  { %v275_v5 = vsel %vm265_vm15, %v272_v61, %v274_v3  ;;  %v279_v6 = vsel %vm265_vm15, %v276_v62, %v278_v48  ;;  %v350_v17 = vand.u32 31, %v348_v13  ;;  %v287_v19 = vmul.u32 %v280_v43, %v271_v18 }
  0x89   :  { %v1285_v7 = vmul.u32.u64.low %v280_v43, %v279_v6  ;;  %v1286_v9 = vmul.u32.u64.high %v280_v43, %v279_v6, %v1285_v7  ;;  %v1288_v10 = vmul.u32.u64.low %v280_v43, %v275_v5  ;;  %v1289_v8 = vmul.u32.u64.high %v280_v43, %v275_v5, %v1288_v10 }
  0x8a   :  { %v349_v23 = vshrl.u32 %v348_v13, 5  ;;  %v351_v14 = vsub.s32 32, %v350_v17  ;;  %v353_v24 = vshll.u32 %v1130_v38, %v350_v17  ;;  %v356_v25 = vshll.u32 %v1131_v40, %v350_v17 }
  0x8b   :  { %vm289_vm2 = vc.u32 %v1286_v9, %v1288_v10  ;;  %v290_v22 = vadd.s32 1, %v1289_v8  ;;  %v359_v26 = vshll.u32 %v1132_v42, %v350_v17  ;;  %v362_v27 = vshll.u32 %v1133_v44, %v350_v17 }
  0x8c   :  { %v354_v30 = vshrl.u32 %v1131_v40, %v351_v14  ;;  %v357_v31 = vshrl.u32 %v1132_v42, %v351_v14  ;;  %v360_v37 = vshrl.u32 %v1133_v44, %v351_v14  ;;  %v363_v20 = vshrl.u32 %v1134_v46, %v351_v14 }
  0x8d   :  { %v291_v29 = vsel %vm289_vm2, %v290_v22, %v1289_v8  ;;  %v365_v15 = vshll.u32 %v1134_v46, %v350_v17  ;;  %v366_v35 = vshrl.u32 %v1135_v54, %v351_v14  ;;  %vm368_vm3 = vcmp.lt.s32.totalorder %v349_v23, 1 }
  0x8e   :  { %v292_v33 = vadd.s32 %v291_v29, %v287_v19  ;;  %v355_v21 = vor.u32 %v354_v30, %v353_v24  ;;  %v358_v39 = vor.u32 %v357_v31, %v356_v25  ;;  %v352_v43 = vshrl.u32 %v1130_v38, %v351_v14 }
  0x8f   :  { %v361_v45 = vor.u32 %v360_v37, %v359_v26  ;;  %v364_v47 = vor.u32 %v363_v20, %v362_v27  ;;  %v367_v49 = vor.u32 %v366_v35, %v365_v15  ;;  %vm369_vm4 = vcmp.lt.s32.totalorder %v349_v23, 2 }
  0x90   :  { %v293_v41 = vadd.s32 536870912, %v292_v33  ;;  %vm370_vm5 = vcmp.lt.s32.totalorder %v349_v23, 3  ;;  %vm371_vm6 = vcmp.lt.s32.totalorder %v349_v23, 4  ;;  %v376_v52 = vsel %vm368_vm3, %v355_v21, %v358_v39 }
  0x91   :  { %v373_v51 = vsel %vm371_vm6, %v361_v45, 2102212464  ;;  %v377_v53 = vsel %vm371_vm6, %v364_v47, 920167782  ;;  %v380_v56 = vsel %vm368_vm3, %v358_v39, %v361_v45  ;;  %v381_v57 = vsel %vm371_vm6, %v367_v49, 1326507024 }
  0x92   :  { %v294_v50 = vshrl.u32 %v293_v41, 30  ;;  %v378_v55 = vsel %vm370_vm5, %v361_v45, %v377_v53  ;;  %v372_v16 = vsel %vm368_vm3, %v352_v43, %v355_v21  ;;  %v374_v59 = vsel %vm370_vm5, %v358_v39, %v373_v51 }
  0x93   :  { %v379_v60 = vsel %vm369_vm4, %v376_v52, %v378_v55  ;;  %v382_v61 = vsel %vm370_vm5, %v364_v47, %v381_v57  ;;  %v375_v2 = vsel %vm369_vm4, %v372_v16, %v374_v59  ;;  %v288_v17 = vadd.s32 %v1288_v10, %v1286_v9 }
  0x94   :  { %v295_v58 = vshll.u32 %v294_v50, 30  ;;  %v1311_v62 = vmul.u32.u64.low %v384_v32, %v379_v60  ;;  %v1312_v0 = vmul.u32.u64.high %v384_v32, %v379_v60, %v1311_v62  ;;  %v383_v63 = vsel %vm369_vm4, %v380_v56, %v382_v61 }
  0x95   :  { %v1316_v3 = vmul.u32.u64.low %v384_v32, %v383_v63  ;;  %v1317_v48 = vmul.u32.u64.high %v384_v32, %v383_v63, %v1316_v3  ;;  %v391_v6 = vmul.u32 %v384_v32, %v375_v2  ;;  %v318_v21 = vsub.s32 4, %v294_v50 }
  0x96   :  { %v296_v1 = vsub.s32 %v292_v33, %v295_v58  ;;  %v394_v18 = vadd.s32 1, %v1312_v0  ;;  %vm1331_vm14 = vcmp.le.f32.partialorder %v336_v34, 0.7853982  ;;  %vm338_vm15 = vcmp.lt.s32.totalorder %v1268_v28, 0 }
  0x97   :  { %vm393_vm7 = vc.u32 %v1317_v48, %v1311_v62  ;;  %v319_v41 = vsel %vm234_vm9, %v318_v21, %v294_v50  ;;  %v392_v47 = vadd.s32 %v1311_v62, %v1317_v48  ;;  %vm324_vm1 = vweird.f32 %v1261_v11 }
  0x98   :  { %v298_v4 = vsub.s32 0, %v296_v1  ;;  %v395_v8 = vsel %vm393_vm7, %v394_v18, %v1312_v0  ;;  %v321_v51 = vsel %vm233_vm10, 0, %v319_v41  ;;  %vm428_vm6 = vweird.f32 %v1268_v28 }
  0x99   :  { %v396_v36 = vadd.s32 %v395_v8, %v391_v6  ;;  %v325_v57 = vadd.s32 3, %v321_v51 }
  0x9a   :  { %v1011_v5 = vmin.u32 %v298_v4, %v296_v1 }
  0x9b   :  { %v397_v19 = vadd.s32 536870912, %v396_v36  ;;  %v326_v50 = vand.u32 3, %v325_v57 }
  0x9c   :  { %v300_v7 = vclz %v1011_v5 }
  0x9d   :  { %v398_v25 = vshrl.u32 %v397_v19, 30  ;;  %vm331_vm12 = vcmp.eq.s32.totalorder %v326_v50, 2  ;;  %vm328_vm13 = vcmp.eq.s32.totalorder %v326_v50, 0  ;;  %vm327_vm0 = vcmp.lt.s32.totalorder %v326_v50, 2 }
  0x9e   :  { %v1012_v13 = vadd.s32 4294967294, %v300_v7 }
  0x9f   :  { %v399_v29 = vshll.u32 %v398_v25, 30  ;;  %v422_v62 = vsub.s32 4, %v398_v25 }
  0xa0   :  { %vm1013_vm8 = vcmp.lt.s32.totalorder %v1012_v13, 0 }
  0xa1   :  { %v303_v22 = vsel %vm1013_vm8, 0, %v1012_v13  ;;  %v400_v32 = vsub.s32 %v396_v36, %v399_v29  ;;  %v423_v5 = vsel %vm338_vm15, %v422_v62, %v398_v25 }
  0xa2   :  { %v304_v23 = vsub.s32 32, %v303_v22  ;;  %v305_v14 = vshll.u32 %v296_v1, %v303_v22  ;;  %v308_v24 = vsub.s32 4294967266, %v303_v22  ;;  %v425_v34 = vsel %vm1331_vm14, 0, %v423_v5 }
  0xa3   :  { %v402_v20 = vsub.s32 0, %v400_v32  ;;  %v429_v22 = vadd.s32 3, %v425_v34 }
  0xa4   :  { %v306_v26 = vshrl.u32 %v288_v17, %v304_v23  ;;  %v309_v27 = vadd.s32 127, %v308_v24 }
  0xa5   :  { %v1015_v39 = vmin.u32 %v402_v20, %v400_v32  ;;  %v430_v24 = vand.u32 3, %v429_v22 }
  0xa6   :  { %v307_v30 = vor.u32 %v306_v26, %v305_v14  ;;  %v310_v31 = vshll.u32 %v309_v27, 23 }
  0xa7   :  { %v404_v10 = vclz %v1015_v39  ;;  %vm435_vm3 = vcmp.eq.s32.totalorder %v430_v24, 2  ;;  %vm432_vm4 = vcmp.eq.s32.totalorder %v430_v24, 0  ;;  %vm431_vm5 = vcmp.lt.s32.totalorder %v430_v24, 2 }
  0xa8   :  { %v311_v33 = vor.u32 4788187, %v310_v31  ;;  %v314_v37 = vcvt.s32.f32 %v307_v30 }
  0xa9   :  { %v1016_v43 = vadd.s32 4294967294, %v404_v10 }
  0xaa   :  { %v312_v15 = vand.u32 2147483647, %v311_v33 }
  0xab   :  { %vm1017_vm11 = vcmp.lt.s32.totalorder %v1016_v43, 0 }
  0xac   :  { %v315_v9 = vmul.f32 %v314_v37, %v312_v15  ;;  %v407_v52 = vsel %vm1017_vm11, 0, %v1016_v43 }
  0xad   :  { %v408_v53 = vsub.s32 32, %v407_v52  ;;  %v409_v55 = vshll.u32 %v400_v32, %v407_v52  ;;  %v412_v56 = vsub.s32 4294967266, %v407_v52 }
  0xae   :  { %v316_v35 = vxor.u32 2147483648, %v315_v9 }
  0xaf   :  { %v410_v58 = vshrl.u32 %v392_v47, %v408_v53  ;;  %v413_v16 = vadd.s32 127, %v412_v56 }
  0xb0   :  { %v317_v45 = vsel %vm234_vm9, %v316_v35, %v315_v9 }
  0xb1   :  { %v320_v49 = vsel %vm233_vm10, %v1261_v11, %v317_v45  ;;  %v411_v12 = vor.u32 %v410_v58, %v409_v55  ;;  %v414_v59 = vshll.u32 %v413_v16, 23 }
  0xb2   :  { %1094 = vcosq.f32 %v320_v49 }
  0xb3   :  { %1096 = vsinq.f32 %v320_v49  ;;  %v415_v60 = vor.u32 4788187, %v414_v59  ;;  %v418_v61 = vcvt.s32.f32 %v411_v12 }
  0xb5   :  { %v416_v0 = vand.u32 2147483647, %v415_v60 }
  0xb7   :  { %v419_v63 = vmul.f32 %v418_v61, %v416_v0 }
  0xb9   :  { %v420_v18 = vxor.u32 2147483648, %v419_v63 }
  0xbb   :  { %v421_v8 = vsel %vm338_vm15, %v420_v18, %v419_v63 }
  0xbc   :  { %v1095_v1 = vpop.eup %1094  ;;  %v424_v36 = vsel %vm1331_vm14, %v1268_v28, %v421_v8 }
  0xbd   :  { %v1097_v2 = vpop.eup %1096  ;;  %v332_v3 = vxor.u32 2147483648, %v1095_v1  ;;  %1098 = vcosq.f32 %v424_v36 }
  0xbe   :  { %v329_v4 = vxor.u32 2147483648, %v1097_v2  ;;  %1100 = vsinq.f32 %v424_v36 }
  0xbf   :  { %v333_v6 = vsel %vm331_vm12, %v332_v3, %v1097_v2 }
  0xc0   :  { %v330_v7 = vsel %vm328_vm13, %v1095_v1, %v329_v4 }
  0xc1   :  { %v334_v13 = vsel %vm327_vm0, %v330_v7, %v333_v6 }
  0xc2   :  { %v1342_v17 = vsel %vm324_vm1, nan, %v334_v13 }
  0xc3   :  { %v443_v19 = vand.u32 2139095040, %v1342_v17  ;;  %v440_v11 = vand.u32 2147483647, %v1342_v17 }
  0xc5   :  { %v444_v23 = vshrl.u32 %v443_v19, 23  ;;  %v447_v26 = vand.u32 8388607, %v440_v11 }
  0xc7   :  { %v1018_v14 = vadd.s32 4294967169, %v444_v23  ;;  %v1099_v27 = vpop.eup %1098  ;;  %v448_v37 = vor.u32 8388608, %v447_v26 }
  0xc8   :  { %v1101_v30 = vpop.eup %1100  ;;  %v436_v31 = vxor.u32 2147483648, %v1099_v27 }
  0xc9   :  { %v450_v25 = vadd.s32 1, %v1018_v14  ;;  %v433_v33 = vxor.u32 2147483648, %v1101_v30  ;;  %v488_v55 = vshll.u32 %v448_v37, 8 }
  0xca   :  { %v437_v15 = vsel %vm435_vm3, %v436_v31, %v1101_v30  ;;  %vm442_vm3 = vcmp.lt.s32.totalorder %v1342_v17, 0 }
  0xcb   :  { %vm451_vm2 = vcmp.gt.s32.totalorder %v450_v25, 0  ;;  %v434_v10 = vsel %vm432_vm4, %v1099_v27, %v433_v33  ;;  %vm441_vm4 = vcmp.le.f32.partialorder %v440_v11, 0.7853982 }
  0xcc   :  { %v452_v29 = vsel %vm451_vm2, %v450_v25, 0  ;;  %v438_v56 = vsel %vm431_vm5, %v434_v10, %v437_v15 }
  0xcd   :  { %v454_v32 = vand.u32 31, %v452_v29  ;;  %v453_v20 = vshrl.u32 %v452_v29, 5  ;;  %v1363_v63 = vsel %vm428_vm6, nan, %v438_v56 }
  0xce   :  { %v547_v36 = vand.u32 2139095040, %v1363_v63  ;;  %v544_v25 = vand.u32 2147483647, %v1363_v63 }
  0xcf   :  { %v455_v21 = vsub.s32 32, %v454_v32  ;;  %v457_v39 = vshll.u32 %v1130_v38, %v454_v32  ;;  %v460_v9 = vshll.u32 %v1131_v40, %v454_v32  ;;  %v463_v35 = vshll.u32 %v1132_v42, %v454_v32 }
  0xd0   :  { %v466_v41 = vshll.u32 %v1133_v44, %v454_v32  ;;  %v469_v43 = vshll.u32 %v1134_v46, %v454_v32  ;;  %vm472_vm7 = vcmp.lt.s32.totalorder %v453_v20, 1  ;;  %vm474_vm8 = vcmp.lt.s32.totalorder %v453_v20, 3 }
  0xd1   :  { %v456_v45 = vshrl.u32 %v1130_v38, %v455_v21  ;;  %v458_v47 = vshrl.u32 %v1131_v40, %v455_v21  ;;  %v461_v49 = vshrl.u32 %v1132_v42, %v455_v21  ;;  %v464_v51 = vshrl.u32 %v1133_v44, %v455_v21 }
  0xd2   :  { %v467_v52 = vshrl.u32 %v1134_v46, %v455_v21  ;;  %v470_v53 = vshrl.u32 %v1135_v54, %v455_v21  ;;  %vm473_vm9 = vcmp.lt.s32.totalorder %v453_v20, 2  ;;  %vm475_vm10 = vcmp.lt.s32.totalorder %v453_v20, 4 }
  0xd3   :  { %v459_v57 = vor.u32 %v458_v47, %v457_v39  ;;  %v462_v58 = vor.u32 %v461_v49, %v460_v9  ;;  %v465_v16 = vor.u32 %v464_v51, %v463_v35  ;;  %v548_v19 = vshrl.u32 %v547_v36, 23 }
  0xd4   :  { %v468_v12 = vor.u32 %v467_v52, %v466_v41  ;;  %v471_v59 = vor.u32 %v470_v53, %v469_v43  ;;  %v551_v31 = vand.u32 8388607, %v544_v25 }
  0xd5   :  { %v476_v50 = vsel %vm472_vm7, %v456_v45, %v459_v57  ;;  %v480_v60 = vsel %vm472_vm7, %v459_v57, %v462_v58  ;;  %v477_v61 = vsel %vm475_vm10, %v465_v16, 2102212464  ;;  %v484_v62 = vsel %vm472_vm7, %v462_v58, %v465_v16 }
  0xd6   :  { %v481_v0 = vsel %vm475_vm10, %v468_v12, 920167782  ;;  %v485_v1 = vsel %vm475_vm10, %v471_v59, 1326507024  ;;  %v478_v2 = vsel %vm474_vm8, %v462_v58, %v477_v61  ;;  %v1022_v22 = vadd.s32 4294967169, %v548_v19 }
  0xd7   :  { %v482_v3 = vsel %vm474_vm8, %v465_v16, %v481_v0  ;;  %v486_v48 = vsel %vm474_vm8, %v468_v12, %v485_v1  ;;  %v479_v4 = vsel %vm473_vm9, %v476_v50, %v478_v2  ;;  %v552_v41 = vor.u32 8388608, %v551_v31 }
  0xd8   :  { %v483_v18 = vsel %vm473_vm9, %v480_v60, %v482_v3  ;;  %v487_v5 = vsel %vm473_vm9, %v484_v62, %v486_v48  ;;  %v495_v34 = vmul.u32 %v488_v55, %v479_v4  ;;  %v554_v24 = vadd.s32 1, %v1022_v22 }
  0xd9   :  { %v1365_v6 = vmul.u32.u64.low %v488_v55, %v487_v5  ;;  %v1366_v7 = vmul.u32.u64.high %v488_v55, %v487_v5, %v1365_v6  ;;  %v1368_v8 = vmul.u32.u64.low %v488_v55, %v483_v18  ;;  %v1369_v13 = vmul.u32.u64.high %v488_v55, %v483_v18, %v1368_v8 }
  0xda   :  { %vm555_vm12 = vcmp.gt.s32.totalorder %v554_v24, 0  ;;  %v592_v16 = vshll.u32 %v552_v41, 8  ;;  %vm532_vm9 = vweird.f32 %v1342_v17 }
  0xdb   :  { %vm497_vm11 = vc.u32 %v1366_v7, %v1368_v8  ;;  %v498_v28 = vadd.s32 1, %v1369_v13  ;;  %v556_v27 = vsel %vm555_vm12, %v554_v24, 0  ;;  %v496_v2 = vadd.s32 %v1368_v8, %v1366_v7 }
  0xdc   :  { %v558_v30 = vand.u32 31, %v556_v27  ;;  %v557_v20 = vshrl.u32 %v556_v27, 5 }
  0xdd   :  { %v499_v23 = vsel %vm497_vm11, %v498_v28, %v1369_v13 }
  0xde   :  { %v500_v14 = vadd.s32 %v499_v23, %v495_v34  ;;  %v559_v33 = vsub.s32 32, %v558_v30  ;;  %v561_v37 = vshll.u32 %v1130_v38, %v558_v30  ;;  %v564_v15 = vshll.u32 %v1131_v40, %v558_v30 }
  0xdf   :  { %v567_v21 = vshll.u32 %v1132_v42, %v558_v30  ;;  %v570_v39 = vshll.u32 %v1133_v44, %v558_v30  ;;  %v573_v35 = vshll.u32 %v1134_v46, %v558_v30  ;;  %vm576_vm13 = vcmp.lt.s32.totalorder %v557_v20, 1 }
  0xe0   :  { %v501_v26 = vadd.s32 536870912, %v500_v14  ;;  %v562_v10 = vshrl.u32 %v1131_v40, %v559_v33  ;;  %v565_v43 = vshrl.u32 %v1132_v42, %v559_v33  ;;  %v568_v45 = vshrl.u32 %v1133_v44, %v559_v33 }
  0xe1   :  { %v571_v47 = vshrl.u32 %v1134_v46, %v559_v33  ;;  %v560_v51 = vshrl.u32 %v1130_v38, %v559_v33  ;;  %v574_v53 = vshrl.u32 %v1135_v54, %v559_v33  ;;  %vm578_vm14 = vcmp.lt.s32.totalorder %v557_v20, 3 }
  0xe2   :  { %v1376_v29 = vshrl.u32 %v501_v26, 30  ;;  %v563_v52 = vor.u32 %v562_v10, %v561_v37  ;;  %v566_v55 = vor.u32 %v565_v43, %v564_v15  ;;  %v569_v56 = vor.u32 %v568_v45, %v567_v21 }
  0xe3   :  { %v572_v57 = vor.u32 %v571_v47, %v570_v39  ;;  %v575_v58 = vor.u32 %v574_v53, %v573_v35  ;;  %vm579_vm15 = vcmp.lt.s32.totalorder %v557_v20, 4  ;;  %vm577_vm0 = vcmp.lt.s32.totalorder %v557_v20, 2 }
  0xe4   :  { %v503_v32 = vshll.u32 %v1376_v29, 30  ;;  %v580_v44 = vsel %vm576_vm13, %v560_v51, %v563_v52  ;;  %v584_v12 = vsel %vm576_vm13, %v563_v52, %v566_v55  ;;  %v581_v46 = vsel %vm579_vm15, %v569_v56, 2102212464 }
  0xe5   :  { %v585_v59 = vsel %vm579_vm15, %v572_v57, 920167782  ;;  %v588_v50 = vsel %vm576_vm13, %v566_v55, %v569_v56  ;;  %v589_v38 = vsel %vm579_vm15, %v575_v58, 1326507024  ;;  %v582_v61 = vsel %vm578_vm14, %v566_v55, %v581_v46 }
  0xe6   :  { %v504_v9 = vsub.s32 %v500_v14, %v503_v32  ;;  %v586_v54 = vsel %vm578_vm14, %v569_v56, %v585_v59  ;;  %v590_v0 = vsel %vm578_vm14, %v572_v57, %v589_v38  ;;  %v583_v18 = vsel %vm577_vm0, %v580_v44, %v582_v61 }
  0xe7   :  { %v587_v62 = vsel %vm577_vm0, %v584_v12, %v586_v54  ;;  %v591_v1 = vsel %vm577_vm0, %v588_v50, %v590_v0  ;;  %v599_v22 = vmul.u32 %v592_v16, %v583_v18  ;;  %v526_v20 = vsub.s32 4, %v1376_v29 }
  0xe8   :  { %v506_v49 = vsub.s32 0, %v504_v9  ;;  %v1395_v3 = vmul.u32.u64.low %v592_v16, %v591_v1  ;;  %v1396_v48 = vmul.u32.u64.high %v592_v16, %v591_v1, %v1395_v3  ;;  %vm546_vm13 = vcmp.lt.s32.totalorder %v1363_v63, 0 }
  0xe9   :  { %v1399_v5 = vmul.u32.u64.low %v592_v16, %v587_v62  ;;  %v1400_v6 = vmul.u32.u64.high %v592_v16, %v587_v62, %v1399_v5  ;;  %v527_v10 = vsel %vm442_vm3, %v526_v20, %v1376_v29  ;;  %vm545_vm14 = vcmp.le.f32.partialorder %v544_v25, 0.7853982 }
  0xea   :  { %v1019_v40 = vmin.u32 %v506_v49, %v504_v9  ;;  %v529_v43 = vsel %vm441_vm4, 0, %v527_v10 }
  0xeb   :  { %vm601_vm2 = vc.u32 %v1396_v48, %v1399_v5  ;;  %v602_v7 = vadd.s32 1, %v1400_v6  ;;  %v741_v49 = vand.u32 3, %v529_v43  ;;  %v533_v51 = vadd.s32 3, %v529_v43 }
  0xec   :  { %v508_v42 = vclz %v1019_v40  ;;  %v600_v11 = vadd.s32 %v1399_v5, %v1396_v48 }
  0xed   :  { %v603_v14 = vsel %vm601_vm2, %v602_v7, %v1400_v6  ;;  %vm746_vm6 = vcmp.eq.s32.totalorder %v741_v49, 2  ;;  %v534_v29 = vand.u32 3, %v533_v51  ;;  %vm743_vm7 = vcmp.eq.s32.totalorder %v741_v49, 0 }
  0xee   :  { %v1020_v60 = vadd.s32 4294967294, %v508_v42  ;;  %v604_v27 = vadd.s32 %v603_v14, %v599_v22  ;;  %vm742_vm8 = vcmp.lt.s32.totalorder %v741_v49, 2  ;;  %vm636_vm2 = vweird.f32 %v1363_v63 }
  0xef   :  { %vm536_vm10 = vcmp.eq.s32.totalorder %v534_v29, 0  ;;  %vm539_vm11 = vcmp.eq.s32.totalorder %v534_v29, 2  ;;  %vm535_vm12 = vcmp.lt.s32.totalorder %v534_v29, 2 }
  0xf0   :  { %vm1021_vm1 = vcmp.lt.s32.totalorder %v1020_v60, 0  ;;  %v605_v31 = vadd.s32 536870912, %v604_v27 }
  0xf1   :  { %v511_v4 = vsel %vm1021_vm1, 0, %v1020_v60 }
  0xf2   :  { %v512_v13 = vsub.s32 32, %v511_v4  ;;  %v513_v36 = vshll.u32 %v504_v9, %v511_v4  ;;  %v516_v34 = vsub.s32 4294967266, %v511_v4  ;;  %v606_v33 = vshrl.u32 %v605_v31, 30 }
  0xf4   :  { %v514_v19 = vshrl.u32 %v496_v2, %v512_v13  ;;  %v517_v28 = vadd.s32 127, %v516_v34  ;;  %v607_v15 = vshll.u32 %v606_v33, 30  ;;  %v630_v4 = vsub.s32 4, %v606_v33 }
  0xf6   :  { %v515_v8 = vor.u32 %v514_v19, %v513_v36  ;;  %v518_v23 = vshll.u32 %v517_v28, 23  ;;  %v608_v39 = vsub.s32 %v604_v27, %v607_v15  ;;  %v631_v13 = vsel %vm546_vm13, %v630_v4, %v606_v33 }
  0xf7   :  { %v633_v19 = vsel %vm545_vm14, 0, %v631_v13 }
  0xf8   :  { %v519_v24 = vor.u32 4788187, %v518_v23  ;;  %v522_v26 = vcvt.s32.f32 %v515_v8  ;;  %v610_v35 = vsub.s32 0, %v608_v39  ;;  %v844_v7 = vand.u32 3, %v633_v19 }
  0xf9   :  { %v637_v23 = vadd.s32 3, %v633_v19 }
  0xfa   :  { %v520_v30 = vand.u32 2147483647, %v519_v24  ;;  %v1023_v41 = vmin.u32 %v610_v35, %v608_v39  ;;  %vm849_vm15 = vcmp.eq.s32.totalorder %v844_v7, 2  ;;  %vm846_vm0 = vcmp.eq.s32.totalorder %v844_v7, 0 }
  0xfb   :  { %vm845_vm1 = vcmp.lt.s32.totalorder %v844_v7, 2 }
  0xfc   :  { %v523_v32 = vmul.f32 %v522_v26, %v520_v30  ;;  %v612_v45 = vclz %v1023_v41 }
  0xfe   :  { %v524_v37 = vxor.u32 2147483648, %v523_v32  ;;  %v1024_v47 = vadd.s32 4294967294, %v612_v45 }
 0x100   :  { %v525_v21 = vsel %vm442_vm3, %v524_v37, %v523_v32  ;;  %vm1025_vm5 = vcmp.lt.s32.totalorder %v1024_v47, 0 }
 0x101   :  { %v528_v9 = vsel %vm441_vm4, %v1342_v17, %v525_v21  ;;  %v615_v52 = vsel %vm1025_vm5, 0, %v1024_v47  ;;  %v638_v17 = vand.u32 3, %v637_v23 }
 0x102   :  { %1102 = vcosq.f32 %v528_v9  ;;  %v616_v55 = vsub.s32 32, %v615_v52  ;;  %v617_v56 = vshll.u32 %v608_v39, %v615_v52  ;;  %v620_v57 = vsub.s32 4294967266, %v615_v52 }
 0x103   :  { %1104 = vsinq.f32 %v528_v9  ;;  %vm640_vm3 = vcmp.eq.s32.totalorder %v638_v17, 0  ;;  %vm643_vm4 = vcmp.eq.s32.totalorder %v638_v17, 2  ;;  %vm639_vm5 = vcmp.lt.s32.totalorder %v638_v17, 2 }
 0x104   :  { %v618_v42 = vshrl.u32 %v600_v11, %v616_v55  ;;  %v621_v44 = vadd.s32 127, %v620_v57 }
 0x106   :  { %v619_v46 = vor.u32 %v618_v42, %v617_v56  ;;  %v622_v59 = vshll.u32 %v621_v44, 23 }
 0x108   :  { %v623_v60 = vor.u32 4788187, %v622_v59  ;;  %v626_v61 = vcvt.s32.f32 %v619_v46 }
 0x10a   :  { %v624_v0 = vand.u32 2147483647, %v623_v60 }
 0x10c   :  { %v1103_v53 = vpop.eup %1102  ;;  %v627_v2 = vmul.f32 %v626_v61, %v624_v0  ;;  %v1136_v61 = vmov 0.0  }
 0x10d   :  { %v1105_v40 = vpop.eup %1104  ;;  %v540_v58 = vxor.u32 2147483648, %v1103_v53 }
 0x10e   :  { %v537_v16 = vxor.u32 2147483648, %v1105_v40  ;;  %v628_v48 = vxor.u32 2147483648, %v627_v2 }
 0x10f   :  { %v748_v12 = vsel %vm746_vm6, %v540_v58, %v1105_v40  ;;  %v541_v1 = vsel %vm539_vm11, %v540_v58, %v1105_v40 }
 0x110   :  { %v745_v50 = vsel %vm743_vm7, %v1103_v53, %v537_v16  ;;  %v538_v62 = vsel %vm536_vm10, %v1103_v53, %v537_v16  ;;  %v629_v18 = vsel %vm546_vm13, %v628_v48, %v627_v2  ;;  %v1137_v48 = vmov 1.0  }
 0x111   :  { %v749_v38 = vsel %vm742_vm8, %v745_v50, %v748_v12  ;;  %v542_v3 = vsel %vm535_vm12, %v538_v62, %v541_v1  ;;  %v632_v6 = vsel %vm545_vm14, %v1363_v63, %v629_v18 }
 0x112   :  { %v750_v54 = vsel %vm532_vm9, nan, %v749_v38  ;;  %v543_v5 = vsel %vm532_vm9, nan, %v542_v3 }
 0x113   :  { %1106 = vrcp.f32 %v750_v54 }
 0x114   :  { %1108 = vcosq.f32 %v632_v6 }
 0x115   :  { %1110 = vsinq.f32 %v632_v6 }
 0x11d   :  { %v1107_v36 = vpop.eup %1106 }
 0x11e   :  { %v855_v34 = vmul.f32 %v1107_v36, %v543_v5  ;;  %v1109_v25 = vpop.eup %1108 }
 0x11f   :  { %v1111_v14 = vpop.eup %1110  ;;  %v644_v24 = vxor.u32 2147483648, %v1109_v25 }
 0x120   :  { %v858_v28 = vsub.f32 1.0, %v855_v34  ;;  %v860_v22 = vadd.f32 1.0, %v855_v34  ;;  %v641_v26 = vxor.u32 2147483648, %v1111_v14 }
 0x121   :  { %v851_v27 = vsel %vm849_vm15, %v644_v24, %v1111_v14  ;;  %v645_v20 = vsel %vm643_vm4, %v644_v24, %v1111_v14 }
 0x122   :  { %v862_v8 = vmul.f32 %v860_v22, %v858_v28  ;;  %v848_v30 = vsel %vm846_vm0, %v1109_v25, %v641_v26  ;;  %v642_v37 = vsel %vm640_vm3, %v1109_v25, %v641_v26 }
 0x123   :  { %v852_v31 = vsel %vm845_vm1, %v848_v30, %v851_v27  ;;  %v646_v39 = vsel %vm639_vm5, %v642_v37, %v645_v20 }
 0x124   :  { %1112 = vrsqrt.f32 %v862_v8  ;;  %v853_v32 = vsel %vm636_vm2, nan, %v852_v31  ;;  %v647_v10 = vsel %vm636_vm2, nan, %v646_v39 }
 0x125   :  { %1114 = vrcp.f32 %v853_v32 }
 0x12e   :  { %v1113_v33 = vpop.eup %1112 }
 0x12f   :  { %v866_v15 = vmul.f32 %v1113_v33, %v855_v34  ;;  %v1115_v43 = vpop.eup %1114 }
 0x130   :  { %v857_v45 = vmul.f32 %v1115_v43, %v647_v10 }
 0x131   :  { %v868_v21 = vand.u32 2147483647, %v866_v15  ;;  %vm916_vm10 = vcmp.lt.f32.partialorder %v866_v15, 0.0 }
 0x132   :  { %v859_v49 = vsub.f32 1.0, %v857_v45  ;;  %v861_v51 = vadd.f32 1.0, %v857_v45  ;;  %v918_v4 = vsel %vm916_vm10, -1.0, %v1137_v48 }
 0x133   :  { %vm870_vm6 = vcmp.gt.f32.partialorder %v868_v21, 2.4142137  ;;  %vm872_vm7 = vcmp.gt.f32.partialorder %v868_v21, 0.41421357  ;;  %v880_v9 = vadd.f32 1.0, %v868_v21  ;;  %v1034_v47 = vadd.f32 -1.0, %v868_v21 }
 0x134   :  { %v863_v11 = vmul.f32 %v861_v51, %v859_v49  ;;  %v890_v54 = vsel %vm872_vm7, 0.7853982, %v1136_v61 }
 0x135   :  { %v882_v35 = vsel %vm872_vm7, %v880_v9, 1.0  ;;  %v876_v52 = vsel %vm872_vm7, %v1034_v47, %v868_v21  ;;  %v892_v1 = vsel %vm870_vm6, 1.5707964, %v890_v54 }
 0x136   :  { %v884_v41 = vsel %vm870_vm6, %v868_v21, %v882_v35  ;;  %v878_v53 = vsel %vm870_vm6, -1.0, %v876_v52 }
 0x137   :  { %1116 = vrcp.f32 %v884_v41 }
 0x138   :  { %1118 = vrsqrt.f32 %v863_v11 }
 0x141   :  { %v1117_v55 = vpop.eup %1116 }
 0x142   :  { %v888_v56 = vmul.f32 %v1117_v55, %v878_v53  ;;  %v1119_v40 = vpop.eup %1118 }
 0x143   :  { %v867_v58 = vmul.f32 %v1119_v40, %v857_v45 }
 0x144   :  { %v894_v63 = vmul.f32 %v888_v56, %v888_v56 }
 0x145   :  { %v869_v42 = vand.u32 2147483647, %v867_v58  ;;  %vm917_vm11 = vcmp.lt.f32.partialorder %v867_v58, 0.0 }
 0x146   :  { %v896_v57 = vmul.f32 0.080537446, %v894_v63  ;;  %v919_v15 = vsel %vm917_vm11, -1.0, %v1137_v48 }
 0x147   :  { %vm871_vm8 = vcmp.gt.f32.partialorder %v869_v42, 2.4142137  ;;  %vm873_vm9 = vcmp.gt.f32.partialorder %v869_v42, 0.41421357  ;;  %v881_v12 = vadd.f32 1.0, %v869_v42  ;;  %v1035_v60 = vadd.f32 -1.0, %v869_v42 }
 0x148   :  { %v1036_v29 = vadd.f32 -0.13877685, %v896_v57  ;;  %v891_v27 = vsel %vm873_vm9, 0.7853982, %v1136_v61 }
 0x149   :  { %v883_v59 = vsel %vm873_vm9, %v881_v12, 1.0  ;;  %v877_v2 = vsel %vm873_vm9, %v1035_v60, %v869_v42  ;;  %v893_v33 = vsel %vm871_vm8, 1.5707964, %v891_v27 }
 0x14a   :  { %v900_v16 = vmul.f32 %v1036_v29, %v894_v63  ;;  %v885_v50 = vsel %vm871_vm8, %v869_v42, %v883_v59  ;;  %v879_v5 = vsel %vm871_vm8, -1.0, %v877_v2 }
 0x14b   :  { %1120 = vrcp.f32 %v885_v50 }
 0x14c   :  { %v902_v44 = vadd.f32 0.19977711, %v900_v16 }
 0x14e   :  { %v904_v46 = vmul.f32 %v902_v44, %v894_v63 }
 0x150   :  { %v1038_v38 = vadd.f32 -0.3333295, %v904_v46 }
 0x152   :  { %v908_v0 = vmul.f32 %v1038_v38, %v894_v63 }
 0x154   :  { %v910_v62 = vmul.f32 %v908_v0, %v888_v56 }
 0x155   :  { %v1121_v13 = vpop.eup %1120 }
 0x156   :  { %v912_v3 = vadd.f32 %v910_v62, %v888_v56  ;;  %v889_v36 = vmul.f32 %v1121_v13, %v879_v5 }
 0x158   :  { %v914_v18 = vadd.f32 %v912_v3, %v892_v1  ;;  %v895_v19 = vmul.f32 %v889_v36, %v889_v36 }
 0x15a   :  { %v920_v6 = vmul.f32 %v918_v4, %v914_v18  ;;  %v897_v7 = vmul.f32 0.080537446, %v895_v19 }
 0x15c   :  { %v922_v34 = vsub.f32 1.5707964, %v920_v6  ;;  %v1037_v23 = vadd.f32 -0.13877685, %v897_v7 }
 0x15e   :  { %v924_v28 = vsub.f32 1.0, %v922_v34  ;;  %v926_v22 = vadd.f32 1.0, %v922_v34  ;;  %v901_v25 = vmul.f32 %v1037_v23, %v895_v19 }
 0x160   :  { %v928_v8 = vmul.f32 %v926_v22, %v924_v28  ;;  %v903_v14 = vadd.f32 0.19977711, %v901_v25 }
 0x162   :  { %1122 = vrsqrt.f32 %v928_v8  ;;  %v905_v24 = vmul.f32 %v903_v14, %v895_v19 }
 0x164   :  { %v1039_v17 = vadd.f32 -0.3333295, %v905_v24 }
 0x166   :  { %v909_v30 = vmul.f32 %v1039_v17, %v895_v19 }
 0x168   :  { %v911_v32 = vmul.f32 %v909_v30, %v889_v36 }
 0x16a   :  { %v913_v20 = vadd.f32 %v911_v32, %v889_v36 }
 0x16c   :  { %v1123_v26 = vpop.eup %1122  ;;  %v915_v39 = vadd.f32 %v913_v20, %v893_v33 }
 0x16d   :  { %v932_v31 = vmul.f32 %v1123_v26, %v922_v34 }
 0x16e   :  { %v921_v10 = vmul.f32 %v919_v15, %v915_v39 }
 0x16f   :  { %v934_v37 = vand.u32 2147483647, %v932_v31  ;;  %vm982_vm0 = vcmp.lt.f32.partialorder %v932_v31, 0.0 }
 0x170   :  { %v923_v41 = vsub.f32 1.5707964, %v921_v10  ;;  %v984_v2 = vsel %vm982_vm0, -1.0, %v1137_v48 }
 0x171   :  { %vm936_vm12 = vcmp.gt.f32.partialorder %v934_v37, 2.4142137  ;;  %vm938_vm13 = vcmp.gt.f32.partialorder %v934_v37, 0.41421357  ;;  %v946_v21 = vadd.f32 1.0, %v934_v37  ;;  %v1040_v43 = vadd.f32 -1.0, %v934_v37 }
 0x172   :  { %v925_v45 = vsub.f32 1.0, %v923_v41  ;;  %v927_v47 = vadd.f32 1.0, %v923_v41  ;;  %v956_v38 = vsel %vm938_vm13, 0.7853982, %v1136_v61 }
 0x173   :  { %v948_v9 = vsel %vm938_vm13, %v946_v21, 1.0  ;;  %v942_v51 = vsel %vm938_vm13, %v1040_v43, %v934_v37  ;;  %v958_v0 = vsel %vm936_vm12, 1.5707964, %v956_v38 }
 0x174   :  { %v950_v35 = vsel %vm936_vm12, %v934_v37, %v948_v9  ;;  %v929_v49 = vmul.f32 %v927_v47, %v925_v45  ;;  %v944_v11 = vsel %vm936_vm12, -1.0, %v942_v51 }
 0x175   :  { %1124 = vrcp.f32 %v950_v35 }
 0x176   :  { %1126 = vrsqrt.f32 %v929_v49 }
 0x17f   :  { %v1125_v52 = vpop.eup %1124 }
 0x180   :  { %v954_v53 = vmul.f32 %v1125_v52, %v944_v11  ;;  %v1127_v63 = vpop.eup %1126 }
 0x181   :  { %v933_v40 = vmul.f32 %v1127_v63, %v923_v41 }
 0x182   :  { %v960_v55 = vmul.f32 %v954_v53, %v954_v53 }
 0x183   :  { %v935_v58 = vand.u32 2147483647, %v933_v40  ;;  %vm983_vm3 = vcmp.lt.f32.partialorder %v933_v40, 0.0 }
 0x184   :  { %v962_v56 = vmul.f32 0.080537446, %v960_v55  ;;  %v985_v27 = vsel %vm983_vm3, -1.0, %v1137_v48 }
 0x185   :  { %vm937_vm14 = vcmp.gt.f32.partialorder %v935_v58, 2.4142137  ;;  %vm939_vm15 = vcmp.gt.f32.partialorder %v935_v58, 0.41421357  ;;  %v947_v42 = vadd.f32 1.0, %v935_v58  ;;  %v1041_v50 = vadd.f32 -1.0, %v935_v58 }
 0x186   :  { %v1042_v57 = vadd.f32 -0.13877685, %v962_v56  ;;  %v957_v25 = vsel %vm939_vm15, 0.7853982, %v1136_v61 }
 0x187   :  { %v949_v12 = vsel %vm939_vm15, %v947_v42, 1.0  ;;  %v943_v62 = vsel %vm939_vm15, %v1041_v50, %v935_v58  ;;  %v959_v17 = vsel %vm937_vm14, 1.5707964, %v957_v25 }
 0x188   :  { %v966_v29 = vmul.f32 %v1042_v57, %v960_v55  ;;  %v951_v46 = vsel %vm937_vm14, %v935_v58, %v949_v12  ;;  %v945_v4 = vsel %vm937_vm14, -1.0, %v943_v62 }
 0x189   :  { %1128 = vrcp.f32 %v951_v46 }
 0x18a   :  { %v968_v16 = vadd.f32 0.19977711, %v966_v29 }
 0x18c   :  { %v970_v44 = vmul.f32 %v968_v16, %v960_v55 }
 0x18e   :  { %v1044_v59 = vadd.f32 -0.3333295, %v970_v44 }
 0x190   :  { %v974_v60 = vmul.f32 %v1044_v59, %v960_v55 }
 0x192   :  { %v976_v54 = vmul.f32 %v974_v60, %v954_v53 }
 0x193   :  { %v1129_v5 = vpop.eup %1128 }
 0x194   :  { %v978_v1 = vadd.f32 %v976_v54, %v954_v53  ;;  %v955_v6 = vmul.f32 %v1129_v5, %v945_v4 }
 0x196   :  { %v980_v3 = vadd.f32 %v978_v1, %v958_v0  ;;  %v961_v36 = vmul.f32 %v955_v6, %v955_v6 }
 0x198   :  { %v986_v18 = vmul.f32 %v984_v2, %v980_v3  ;;  %v963_v19 = vmul.f32 0.080537446, %v961_v36 }
 0x19a   :  { %vm988_vm1 = vcmp.ne.f32.partialorder %v986_v18, %v986_v18  ;;  %vm990_vm2 = vcmp.ne.f32.partialorder %v986_v18, 0.0  ;;  %v1043_v28 = vadd.f32 -0.13877685, %v963_v19 }
 0x19b   :  { %v992_v13 = vsel %vm990_vm2, 1.0, %v1136_v61 }
 0x19c   :  { %v994_v34 = vsel %vm988_vm1, %v986_v18, %v992_v13  ;;  %v967_v22 = vmul.f32 %v1043_v28, %v961_v36 }
 0x19d   :  { %996 = vst [vmem:[%s1467_s1] sm:$0xff] %v994_v34 }
 0x19e   :  { %v969_v7 = vadd.f32 0.19977711, %v967_v22 }
 0x1a0   :  { %v971_v8 = vmul.f32 %v969_v7, %v961_v36 }
 0x1a2   :  { %v1045_v23 = vadd.f32 -0.3333295, %v971_v8 }
 0x1a4   :  { %v975_v14 = vmul.f32 %v1045_v23, %v961_v36 }
 0x1a6   :  { %v977_v24 = vmul.f32 %v975_v14, %v955_v6 }
 0x1a8   :  { %v979_v26 = vadd.f32 %v977_v24, %v955_v6 }
 0x1aa   :  { %v981_v30 = vadd.f32 %v979_v26, %v959_v17 }
 0x1ac   :  { %v987_v31 = vmul.f32 %v985_v27, %v981_v30 }
 0x1ae   :  { %vm989_vm4 = vcmp.ne.f32.partialorder %v987_v31, %v987_v31  ;;  %vm991_vm5 = vcmp.ne.f32.partialorder %v987_v31, 0.0 }
 0x1af   :  { %v993_v32 = vsel %vm991_vm5, 1.0, %v1136_v61 }
 0x1b0   :  { %v995_v33 = vsel %vm989_vm4, %v987_v31, %v993_v32 }
 0x1b1   :  { %997 = vst [vmem:[%s1467_s1 + $0x8] sm:$0xff] %v995_v33 }

</bundles_post_ra>
